<compile_context>
chip_gen: v6e
topology: v6e:2x2x1
jax: 0.10.0
libtpu: 0.0.40
codegen_flags: <defaults>
</compile_context>

<pallas_src>
import jax
import jax.numpy as jnp
from jax.experimental import pallas as pl
from jax.experimental.pallas import tpu as pltpu


# -----------------------------------------------------------------------------
# Constants / budgets
# -----------------------------------------------------------------------------
_LANE = 128
_SUBLANE = 8
_TARGET_BLOCK_BYTES = 4 * 1024 * 1024     # per activation block (x); in+out double-buffered ~16 MiB
_VMEM_LIMIT_BYTES = 32 * 1024 * 1024      # safe on v5e/v6e (128 MiB phys) and v7x (64 MiB phys)
_MIN_PALLAS_ELEMS = 64 * 1024             # below this a standalone Pallas call is pure overhead


# -----------------------------------------------------------------------------
# Kernel (shared by the 2-D and 3-D paths; s_ref broadcasts against x_ref)
# -----------------------------------------------------------------------------
def _scale_mul_kernel(s_ref, x_ref, o_ref):
    # s_ref: (bB, 1) f32            vs x_ref: (bB, tL)     in the 2-D path
    # s_ref: (1, 1, 1) f32          vs x_ref: (1, tR, 128) in the 3-D path
    # Multiply happens in f32 (promotion), cast to the output dtype on store.
    o_ref[...] = (x_ref[...] * s_ref[...]).astype(o_ref.dtype)


# -----------------------------------------------------------------------------
# Tiling helpers
# -----------------------------------------------------------------------------
def _pick_lane_tile(L: int, cap: int) -> int:
    """Largest multiple of 128 that divides L (L % 128 == 0) and is <= cap."""
    if L <= cap:
        return L
    t = cap - (cap % _LANE)
    while t >= _LANE:
        if L % t == 0:
            return t
        t -= _LANE
    return L


def _pick_batch_tile(B: int, tL: int, target_elems: int) -> int:
    """Samples per grid step: a multiple of 8 dividing B, or full B."""
    want = max(1, target_elems // max(tL, 1))
    if B <= want:
        return B
    if B % _SUBLANE != 0:
        return B  # awkward batch handled by the per-sample path / full block
    bB = max(_SUBLANE, (min(want, B) // _SUBLANE) * _SUBLANE)
    while bB >= _SUBLANE:
        if B % bB == 0:
            return bB
        bB -= _SUBLANE
    return B


def _pick_row_tile(R: int, cap: int) -> int:
    """Row tile: multiple of 8 dividing R and <= cap, else full R (legal)."""
    if R <= cap:
        return R
    t = (min(cap, R) // _SUBLANE) * _SUBLANE
    while t >= _SUBLANE:
        if R % t == 0:
            return t
        t -= _SUBLANE
    return R


def _fits_vmem(block_bytes: int) -> bool:
    # in + out, each double-buffered, plus slack for the scale block/metadata.
    return 4 * block_bytes + (1 << 20) <= _VMEM_LIMIT_BYTES


# -----------------------------------------------------------------------------
# Pallas paths
# -----------------------------------------------------------------------------
def _drop_path_2d(x2d, scale, target_elems):
    """(B, Lp) layout, blocks (bB, tL). Best packing when B % 8 == 0."""
    B, Lp = x2d.shape
    itemsize = jnp.dtype(x2d.dtype).itemsize

    tL = _pick_lane_tile(Lp, max(_LANE, target_elems // _SUBLANE))
    bB = _pick_batch_tile(B, tL, target_elems)

    # v7x has two TensorCores sharded over parallel grid axes; make sure the
    # grid has at least two steps when it is cheap to do so.
    if (B // bB) * (Lp // tL) < 2:
        if tL % (2 * _LANE) == 0:
            tL //= 2
        elif bB % (2 * _SUBLANE) == 0:
            bB //= 2

    if not _fits_vmem(bB * tL * itemsize):
        return None

    grid = (B // bB, Lp // tL)
    return pl.pallas_call(
        _scale_mul_kernel,
        out_shape=jax.ShapeDtypeStruct((B, Lp), x2d.dtype),
        grid=grid,
        in_specs=[
            pl.BlockSpec((bB, 1), lambda i, j: (i, 0)),    # per-sample scale
            pl.BlockSpec((bB, tL), lambda i, j: (i, j)),   # activations
        ],
        out_specs=pl.BlockSpec((bB, tL), lambda i, j: (i, j)),
        compiler_params=pltpu.CompilerParams(
            dimension_semantics=("parallel", "parallel"),
            vmem_limit_bytes=_VMEM_LIMIT_BYTES),
        cost_estimate=pl.CostEstimate(
            flops=B * Lp, transcendentals=0,
            bytes_accessed=2 * B * Lp * itemsize + B * 4),
    )(scale.reshape(B, 1), x2d)


def _drop_path_per_sample(x2d, scale, target_elems):
    """Awkward B: pack each sample as (rows, 128); blocks (1, tR, 128)."""
    B, Lp = x2d.shape
    itemsize = jnp.dtype(x2d.dtype).itemsize
    R = Lp // _LANE
    x3 = x2d.reshape(B, R, _LANE)

    tR = _pick_row_tile(R, max(_SUBLANE, target_elems // _LANE))
    if B * (R // tR) < 2 and tR % (2 * _SUBLANE) == 0:
        tR //= 2

    if not _fits_vmem(tR * _LANE * itemsize):
        return None

    grid = (B, R // tR)
    out3 = pl.pallas_call(
        _scale_mul_kernel,
        out_shape=jax.ShapeDtypeStruct((B, R, _LANE), x2d.dtype),
        grid=grid,
        in_specs=[
            pl.BlockSpec((1, 1, 1), lambda b, r: (b, 0, 0)),       # scalar scale
            pl.BlockSpec((1, tR, _LANE), lambda b, r: (b, r, 0)),  # activations
        ],
        out_specs=pl.BlockSpec((1, tR, _LANE), lambda b, r: (b, r, 0)),
        compiler_params=pltpu.CompilerParams(
            dimension_semantics=("parallel", "parallel"),
            vmem_limit_bytes=_VMEM_LIMIT_BYTES),
        cost_estimate=pl.CostEstimate(
            flops=B * Lp, transcendentals=0,
            bytes_accessed=2 * B * Lp * itemsize + B * 4),
    )(scale.reshape(B, 1, 1), x3)
    return out3.reshape(B, Lp)


# -----------------------------------------------------------------------------
# Wrapper (semantics of torch drop_path(x, drop_prob, training))
# -----------------------------------------------------------------------------
def drop_path_pallas(x, drop_prob: float = 0.0, training: bool = False, *, key=None):
    if drop_prob == 0.0 or not training:
        return x
    keep_prob = 1.0 - float(drop_prob)
    if keep_prob <= 0.0:
        # Reference: bernoulli_(0) -> all zeros, no division -> output is zeros.
        return jnp.zeros_like(x)
    if key is None:
        raise ValueError(
            "drop_path_pallas: an explicit PRNG `key` is required when training "
            "with drop_prob > 0 (a silent fixed seed would reuse the same drop "
            "mask on every call).")

    orig_shape = x.shape
    B = x.shape[0]
    x2d = x.reshape(B, -1)
    L = x2d.shape[1]

    # Per-sample keep/scale vector, drawn once (independent of tiling choice).
    keep = jax.random.bernoulli(key, p=keep_prob, shape=(B,))
    scale = keep.astype(jnp.float32) / jnp.float32(keep_prob)   # (B,), f32

    def _plain():
        y = x2d.astype(jnp.float32) * scale[:, None]
        return y.astype(x.dtype).reshape(orig_shape)

    # Tiny tensors: standalone HBM-streaming Pallas call is pure per-call
    # overhead; emit plain ops so XLA can fuse with neighbours.
    if B * L < _MIN_PALLAS_ELEMS:
        return _plain()

    itemsize = jnp.dtype(x.dtype).itemsize
    target_elems = max(_SUBLANE * _LANE, _TARGET_BLOCK_BYTES // itemsize)

    # Lane-dense layout: pad flattened feature dim up to a multiple of 128
    # (avoids masked vst.msk tail stores and huge full-L fallback tiles).
    pad = (-L) % _LANE
    Lp = L + pad
    x2dp = jnp.pad(x2d, ((0, 0), (0, pad))) if pad else x2d

    if B % _SUBLANE == 0:
        out2d = _drop_path_2d(x2dp, scale, target_elems)
    elif Lp // _LANE >= _SUBLANE:
        out2d = _drop_path_per_sample(x2dp, scale, target_elems)
    else:
        out2d = _drop_path_2d(x2dp, scale, target_elems)

    if out2d is None:   # chosen tiling would blow the VMEM budget -> plain ops
        return _plain()

    if pad:
        out2d = out2d[:, :L]
    return out2d.reshape(orig_shape)


class DropPath:
    """Mirror of the PyTorch module: holds drop_prob; __call__ applies drop_path."""

    def __init__(self, drop_prob=None):
        self.drop_prob = drop_prob if drop_prob is not None else 0.0
        self.training = True

    def __call__(self, x, key=None):
        return drop_path_pallas(x, self.drop_prob, self.training, key=key)


# -----------------------------------------------------------------------------
# Demo / self-check
# -----------------------------------------------------------------------------
if __name__ == "__main__":
    data_key = jax.random.PRNGKey(0)
    ok = True

    def check_case(x, drop_prob, mask_key):
        """Run the Pallas drop_path and compare against the exact reference."""
        keep_prob = 1.0 - drop_prob
        module = DropPath(drop_prob=drop_prob)
        module.training = True
        y = jax.block_until_ready(module(x, key=mask_key))
        keep = jax.random.bernoulli(mask_key, p=keep_prob, shape=(x.shape[0],))
        scale = keep.astype(jnp.float32) / jnp.float32(keep_prob)
        ref = (x.astype(jnp.float32)
               * scale.reshape((x.shape[0],) + (1,) * (x.ndim - 1))).astype(x.dtype)
        return bool(jnp.allclose(y, ref, atol=1e-5, rtol=1e-5))

    # Case A: B % 8 == 0, large enough -> Pallas 2-D path (multi-step grid).
    k_a, data_key = jax.random.split(data_key)
    x_a = jax.random.normal(k_a, (8, 64, 256), dtype=jnp.float32)
    ok = ok and check_case(x_a, 0.25, jax.random.PRNGKey(1234))

    # Case B: awkward batch (B=3) -> Pallas per-sample 3-D path.
    k_b, data_key = jax.random.split(data_key)
    x_b = jax.random.normal(k_b, (3, 64, 512), dtype=jnp.float32)
    ok = ok and check_case(x_b, 0.5, jax.random.PRNGKey(77))

    # Case C: tiny tensor -> plain fused path (same semantics).
    k_c, data_key = jax.random.split(data_key)
    x_c = jax.random.normal(k_c, (2, 8, 32), dtype=jnp.float32)
    ok = ok and check_case(x_c, 0.25, jax.random.PRNGKey(5))

    # Eval mode / drop_prob=0 is identity.
    module_eval = DropPath(drop_prob=0.25)
    module_eval.training = False
    y_eval = jax.block_until_ready(module_eval(x_a))
    ok = ok and bool(jnp.allclose(y_eval, x_a))

    # drop_prob == 1.0 in training mode -> all zeros, no NaNs.
    module_full = DropPath(drop_prob=1.0)
    module_full.training = True
    y_full = jax.block_until_ready(module_full(x_a, key=jax.random.PRNGKey(7)))
    ok = ok and bool(jnp.all(y_full == 0.0))

    print("KERNEL_OK" if ok else "KERNEL_MISMATCH")
</pallas_src>

<mosaic_0001>
module attributes {stable_mosaic.version = 11 : i64} {
  func.func @_scale_mul_kernel(%arg0: i32, %arg1: i32, %arg2: memref<8x1xf32, #tpu.memory_space<vmem>>, %arg3: memref<8x8192xf32, #tpu.memory_space<vmem>>, %arg4: memref<8x8192xf32, #tpu.memory_space<vmem>>) attributes {dimension_semantics = [#tpu.dimension_semantics<parallel>, #tpu.dimension_semantics<parallel>], iteration_bounds = array<i64: 1, 2>, scalar_prefetch = 0 : i64, scratch_operands = 0 : i64, tpu.core_type = #tpu.core_type<tc>, window_params = [{transform_indices = @transform_0, window_bounds = array<i64: 8, 1>}, {transform_indices = @transform_1, window_bounds = array<i64: 8, 8192>}, {transform_indices = @transform_2, window_bounds = array<i64: 8, 8192>}]} {
    %c0 = arith.constant 0 : index
    %c0_0 = arith.constant 0 : index
    %0 = vector.load %arg3[%c0, %c0_0] : memref<8x8192xf32, #tpu.memory_space<vmem>>, vector<8x8192xf32>
    %c0_1 = arith.constant 0 : index
    %c0_2 = arith.constant 0 : index
    %1 = vector.load %arg2[%c0_1, %c0_2] : memref<8x1xf32, #tpu.memory_space<vmem>>, vector<8x1xf32>
    %2 = vector.broadcast %1 : vector<8x1xf32> to vector<8x8192xf32>
    %3 = arith.mulf %0, %2 : vector<8x8192xf32>
    %c0_3 = arith.constant 0 : index
    %c0_4 = arith.constant 0 : index
    %4 = vector.load %arg4[%c0_3, %c0_4] : memref<8x8192xf32, #tpu.memory_space<vmem>>, vector<8x8192xf32>
    tpu.vector_store %arg4[%c0_3, %c0_4], %3 {strides = array<i32>} : memref<8x8192xf32, #tpu.memory_space<vmem>>, vector<8x8192xf32>,
    return
  }
  func.func @transform_0(%arg0: i32, %arg1: i32) -> (i32, i32) {
    %c0_i32 = arith.constant 0 : i32
    %c0_i32_0 = arith.constant 0 : i32
    return %arg0, %c0_i32 : i32, i32
  }
  func.func @transform_1(%arg0: i32, %arg1: i32) -> (i32, i32) {
    %c0_i32 = arith.constant 0 : i32
    return %arg0, %arg1 : i32, i32
  }
  func.func @transform_2(%arg0: i32, %arg1: i32) -> (i32, i32) {
    %c0_i32 = arith.constant 0 : i32
    return %arg0, %arg1 : i32, i32
  }
}

</mosaic_0001>

<bundles_post_ra>
// kernel: tpu_custom_call.1
= control target key start
LH: loop header
LB: loop body
LE: loop exit
PB: predicated region body
PF: predicated region fallthrough
CT: control target
= control target key end

     0   :  { %7 = vsyncpa [#allocation3], 0  ;;  %s1073_s0 = inlined_call_operand.vmem [shape: f32[8,1], index: 0, kind: input, shape index: {}]   ;;  %s1074_s1 = inlined_call_operand.hbm [shape: f32[8,16384], index: 1, kind: input, shape index: {}]   ;;  %s1075_s2 = inlined_call_operand.hbm [shape: f32[8,16384], index: 2, kind: output, shape index: {}]  }
   0x1   :  { %9 = vsyncpa [#allocation3 + $0x1], 0 }
   0x2   :  { %10 = vsyncpa [#allocation4], 0 }
   0x3   :  { %12 = vsyncpa [#allocation4 + $0x1], 0  ;;  %s721_s9 = smov 0   ;;  %s723_s10 = smov 0  }
   0x4   :  { %s725_s11 = smov 0   ;;  %s727_s12 = smov 0  }
   0x5   :  { %s729_s13 = smov 0   ;;  %s731_s14 = smov 0  }
   0x6 LB: > { %s511_s15 = sadd.s32 4294967295, %s701_s14   ;;  %s512_s16 = sadd.s32 4294967294, %s701_s14   ;;  %s701_s14 = sphi %s731_s14, %s18_s14   ;;  %s697_s13 = sphi %s729_s13, %s1087_s13   ;;  %s693_s12 = sphi %s727_s12, %s1086_s12   ;;  %s689_s11 = sphi %s725_s11, %s1085_s11   ;;  %s685_s10 = sphi %s723_s10, %s1084_s10   ;;  %s681_s9 = sphi %s721_s9, %s1083_s9  }
   0x7   : > { %s27_s17 = sadd.s32 1, %s697_s13  ;;  %s65_s18 = sadd.s32 1, %s689_s11 }
   0x8   : > { %p28_p0 = scmp.ge.s32.totalorder %s27_s17, 2  ;;  %p72_p1 = scmp.ne.s32.totalorder %s689_s11, %s685_s10 }
   0x9   : > { %p73_p2 = scmp.eq.s32.totalorder %s701_s14, 0  ;;  %p78_p3 = scmp.ne.s32.totalorder %s685_s10, %s681_s9 }
   0xa   : > { %s1089_s17 = smov (%p28_p0, %s27_s17), 0  ;;  %p79_p5 = scmp.eq.s32.totalorder %s511_s15, 0 }
   0xb   : > { %p762_p4 = por %p73_p2, %p72_p1  ;;  %s61_s20 = ssub.s32 %s697_s13, %s1089_s17 }
   0xc   : > { %p104_p6 = scmp.eq.s32.totalorder %s511_s15, 1  ;;  %p63_p7 = scmp.eq.s32.totalorder %s61_s20, 0 }
   0xd   : > { %p768_p8 = por %p79_p5, %p78_p3  ;;  %p110_p10 = scmp.eq.s32.totalorder %s512_s16, 1 }
   0xe   : > { %p772_p9 = por %p104_p6, %p72_p1  ;;  %p541_p13 = scmp.lt.s32.totalorder %s701_s14, 2 }
   0xf   : > { %s777_s23 = scalar_select %p63_p7, %s689_s11, %s65_s18  }
  0x10   : > { %p779_p11 = por %p110_p10, %p78_p3  ;;  %s137_s25 = sand.u32 1, %s689_s11  }
  0x11   : > { %s516_s26 = sshll.u32 %s137_s25, 9  ;;  %s527_s27 = sshll.u32 %s697_s13, 13 }
  0x12   : > { %s1079_s24 = scalar_select %p779_p11, 1, 0 }
  0x13   : > { %s149_s30 = scalar_lea.hbm %s1074_s1, %s527_s27  ;;  %s141_s3 = scalar_lea.vmem [#allocation2], %s516_s26 }
  0x14   : > { %s151_s4 = sshll.u32 %s141_s3, 4  ;;  %p792_p0 = pnand %p541_p13, %p762_p4  ;;  %s152_s4 = int_to_ptr.vmem [resolvable:$true] %s151_s4 }
  0x15   : > { %p519_p1 = scmp.ge.s32.totalorder %s701_s14, 1  ;;  %p156_p2 = scmp.lt.s32.totalorder %s701_s14, 3 }
  0x16   : > { %s138_s6 = scalar_lea.sflag [#allocation3], %s137_s25  ;;  %p595_p3 = pneg %p792_p0 }
  0x17   : > { %s606_s7 = scalar_lea.vmem %s152_s4, 8192  ;;  %s703_s8 = smov [#allocation2]  }
  0x18   : > { %p607_p5 = scmp.ne.s32.totalorder %s152_s4, %s606_s7  ;;  %s611_s15 = sshll.u32 %s703_s8, 4  ;;  %s612_s15 = int_to_ptr.vmem [resolvable:$false] %s611_s15 }
  0x19   : > { %s613_s16 = scalar_lea.vmem %s612_s15, 16384  ;;  %p614_p10 = scmp.lt.s32.totalorder %s152_s4, %s612_s15 }
  0x1a   : > { %p609_p6 = pnand %p607_p5, %p595_p3  ;;  %p615_p12 = scmp.lt.s32.totalorder %s613_s16, %s606_s7 }
  0x1c   : > { %p610_p7 = pneg %p609_p6  ;;  %p616_p4 = por %p615_p12, %p614_p10 }
  0x1e   : > { %p617_p13 = pnand %p616_p4, %p610_p7 }
  0x20   : > { %620 = shalt.err (!%p617_p13)
}
  0x21   : > { %536 = dma.hbm_to_vmem [thread:$0]  (!%p792_p0), %s149_s30, 8192, %s152_s4, %s138_s6  }
  0x22   : > { %p157_p11 = pnand %p519_p1, %p156_p2 }
  0x23   : > { %s807_s18 = sand.u32 (!%p157_p11), 1, %s685_s10  }
  0x24   : > { %160 = sbr.rel (%p157_p11) target bundleno = 215 (0xd7), region = 28  ;;  %s520_s19 = sshll.u32 (!%p157_p11), %s807_s18, 9 }
  0x25   : > { %s163_s20 = scalar_lea.sflag (!%p157_p11), [#allocation3], %s807_s18  ;;  %s813_s25 = scalar_lea.vmem (!%p157_p11), [#allocation2], %s520_s19 }
  0x29   : > { %672 = dma.done.wait (%p768_p8), %s163_s20, 8192  }
  0x2a   : > { %674 = vsyncadd (%p768_p8), %s163_s20, 4294959104  ;;  %v704_v0 = vmov 0   ;;  %v261_v1 = vld [vmem:[%s1073_s0] sm:$0xff]  ;;  %v198_v3 = vld [vmem:[%s813_s25 + $0x8] sm:$0xff]  ;;  %s870_s21 = scalar_lea.vmem [#allocation5], %s520_s19  ;;  %s528_s28 = sshll.u32 %s693_s12, 13 }
  0x2b   : > { %592 = vset.pattern.permute.xlu0 %v704_v0  ;;  %v197_v2 = vld [vmem:[%s813_s25] sm:$0xff]  ;;  %v199_v4 = vld [vmem:[%s813_s25 + $0x10] sm:$0xff]  ;;  %v200_v5 = vld [vmem:[%s813_s25 + $0x18] sm:$0xff]  ;;  %s412_s29 = sshll.u32 %s870_s21, 4  ;;  %s1017_s3 = scalar_lea.hbm %s1075_s2, %s528_s28  ;;  %s1019_s29 = int_to_ptr.vmem [resolvable:$true] %s412_s29 }
  0x2c   : > { %264 = vperm.xlu0 %592, %v261_v1   ;;  %v201_v6 = vld [vmem:[%s813_s25 + $0x20] sm:$0xff]  ;;  %v202_v7 = vld [vmem:[%s813_s25 + $0x28] sm:$0xff]  ;;  %v203_v8 = vld [vmem:[%s813_s25 + $0x30] sm:$0xff]  ;;  %s396_s4 = scalar_lea.sflag [#allocation4], %s807_s18  ;;  %s621_s5 = scalar_lea.vmem %s1019_s29, 8192 }
  0x2d   : > { %v204_v9 = vld [vmem:[%s813_s25 + $0x38] sm:$0xff]  ;;  %v205_v10 = vld [vmem:[%s813_s25 + $0x40] sm:$0xff]  ;;  %v206_v11 = vld [vmem:[%s813_s25 + $0x48] sm:$0xff]  ;;  %p622_p8 = scmp.ne.s32.totalorder %s1019_s29, %s621_s5  ;;  %s705_s6 = smov [#allocation5]  }
  0x2e   : > { %v207_v12 = vld [vmem:[%s813_s25 + $0x50] sm:$0xff]  ;;  %v208_v13 = vld [vmem:[%s813_s25 + $0x58] sm:$0xff]  ;;  %v209_v14 = vld [vmem:[%s813_s25 + $0x60] sm:$0xff]  ;;  %s625_s7 = sshll.u32 %s705_s6, 4  ;;  %s626_s7 = int_to_ptr.vmem [resolvable:$false] %s625_s7 }
  0x2f   : > { %v210_v15 = vld [vmem:[%s813_s25 + $0x68] sm:$0xff]  ;;  %v211_v16 = vld [vmem:[%s813_s25 + $0x70] sm:$0xff]  ;;  %v212_v17 = vld [vmem:[%s813_s25 + $0x78] sm:$0xff]  ;;  %p623_p11 = pnand %p622_p8, %p772_p9  ;;  %s627_s8 = scalar_lea.vmem %s626_s7, 16384 }
  0x30   : > { %v213_v19 = vld [vmem:[%s813_s25 + $0x80] sm:$0xff]  ;;  %v214_v20 = vld [vmem:[%s813_s25 + $0x88] sm:$0xff]  ;;  %v215_v21 = vld [vmem:[%s813_s25 + $0x90] sm:$0xff]  ;;  %p628_p0 = scmp.lt.s32.totalorder %s1019_s29, %s626_s7  ;;  %p629_p1 = scmp.lt.s32.totalorder %s627_s8, %s621_s5 }
  0x31   : > { %v216_v22 = vld [vmem:[%s813_s25 + $0x98] sm:$0xff]  ;;  %v217_v23 = vld [vmem:[%s813_s25 + $0xa0] sm:$0xff]  ;;  %v218_v24 = vld [vmem:[%s813_s25 + $0xa8] sm:$0xff]  ;;  %p624_p12 = pneg %p623_p11 }
  0x32   : > { %v219_v25 = vld [vmem:[%s813_s25 + $0xb0] sm:$0xff]  ;;  %v220_v26 = vld [vmem:[%s813_s25 + $0xb8] sm:$0xff]  ;;  %v221_v31 = vld [vmem:[%s813_s25 + $0xc0] sm:$0xff]  ;;  %p630_p2 = por %p629_p1, %p628_p0 }
  0x33   : > { %v222_v32 = vld [vmem:[%s813_s25 + $0xc8] sm:$0xff]  ;;  %v223_v33 = vld [vmem:[%s813_s25 + $0xd0] sm:$0xff]  ;;  %v224_v34 = vld [vmem:[%s813_s25 + $0xd8] sm:$0xff] }
  0x34   : > { %v225_v39 = vld [vmem:[%s813_s25 + $0xe0] sm:$0xff]  ;;  %v226_v40 = vld [vmem:[%s813_s25 + $0xe8] sm:$0xff]  ;;  %v227_v41 = vld [vmem:[%s813_s25 + $0xf0] sm:$0xff]  ;;  %p631_p3 = pnand %p630_p2, %p624_p12 }
  0x35   : > { %v228_v42 = vld [vmem:[%s813_s25 + $0xf8] sm:$0xff]  ;;  %v229_v47 = vld [vmem:[%s813_s25 + $0x100] sm:$0xff]  ;;  %v230_v48 = vld [vmem:[%s813_s25 + $0x108] sm:$0xff] }
  0x36   : > { %v231_v49 = vld [vmem:[%s813_s25 + $0x110] sm:$0xff]  ;;  %v232_v50 = vld [vmem:[%s813_s25 + $0x118] sm:$0xff]  ;;  %v233_v55 = vld [vmem:[%s813_s25 + $0x120] sm:$0xff] }
  0x37   : > { %v234_v56 = vld [vmem:[%s813_s25 + $0x128] sm:$0xff]  ;;  %v235_v57 = vld [vmem:[%s813_s25 + $0x130] sm:$0xff]  ;;  %v236_v58 = vld [vmem:[%s813_s25 + $0x138] sm:$0xff] }
  0x38   : > { %v237_v63 = vld [vmem:[%s813_s25 + $0x140] sm:$0xff]  ;;  %v238_v0 = vld [vmem:[%s813_s25 + $0x148] sm:$0xff]  ;;  %v239_v1 = vld [vmem:[%s813_s25 + $0x150] sm:$0xff] }
  0xa7   : > { %v838_v18 = vpop.permute.xlu0 %264 }
  0xa8   : > { %v267_v27 = vmul.f32 %v838_v18, %v197_v2  ;;  %v268_v28 = vmul.f32 %v838_v18, %v198_v3  ;;  %v269_v29 = vmul.f32 %v838_v18, %v199_v4  ;;  %v270_v30 = vmul.f32 %v838_v18, %v200_v5 }
  0xa9   : > { %v271_v35 = vmul.f32 %v838_v18, %v201_v6  ;;  %v272_v36 = vmul.f32 %v838_v18, %v202_v7  ;;  %v273_v37 = vmul.f32 %v838_v18, %v203_v8  ;;  %v274_v38 = vmul.f32 %v838_v18, %v204_v9  ;;  %v240_v6 = vld [vmem:[%s813_s25 + $0x158] sm:$0xff]  ;;  %v241_v7 = vld [vmem:[%s813_s25 + $0x160] sm:$0xff]  ;;  %v242_v8 = vld [vmem:[%s813_s25 + $0x168] sm:$0xff] }
  0xaa   : > { %v275_v43 = vmul.f32 %v838_v18, %v205_v10  ;;  %v276_v44 = vmul.f32 %v838_v18, %v206_v11  ;;  %v277_v45 = vmul.f32 %v838_v18, %v207_v12  ;;  %v278_v46 = vmul.f32 %v838_v18, %v208_v13  ;;  %331 = vst [vmem:[%s870_s21] sm:$0xff] %v267_v27  ;;  %v243_v13 = vld [vmem:[%s813_s25 + $0x170] sm:$0xff] }
  0xab   : > { %332 = vst [vmem:[%s870_s21 + $0x8] sm:$0xff] %v268_v28  ;;  %333 = vst [vmem:[%s870_s21 + $0x10] sm:$0xff] %v269_v29  ;;  %v279_v51 = vmul.f32 %v838_v18, %v209_v14  ;;  %v280_v52 = vmul.f32 %v838_v18, %v210_v15  ;;  %v281_v53 = vmul.f32 %v838_v18, %v211_v16  ;;  %v244_v14 = vld [vmem:[%s813_s25 + $0x178] sm:$0xff]  ;;  %v245_v15 = vld [vmem:[%s813_s25 + $0x180] sm:$0xff] }
  0xac   : > { %334 = vst [vmem:[%s870_s21 + $0x18] sm:$0xff] %v270_v30  ;;  %v282_v54 = vmul.f32 %v838_v18, %v212_v17  ;;  %335 = vst [vmem:[%s870_s21 + $0x20] sm:$0xff] %v271_v35  ;;  %v283_v59 = vmul.f32 %v838_v18, %v213_v19  ;;  %v284_v60 = vmul.f32 %v838_v18, %v214_v20  ;;  %v249_v28 = vld [vmem:[%s813_s25 + $0x1a0] sm:$0xff]  ;;  %v250_v29 = vld [vmem:[%s813_s25 + $0x1a8] sm:$0xff] }
  0xad   : > { %336 = vst [vmem:[%s870_s21 + $0x28] sm:$0xff] %v272_v36  ;;  %337 = vst [vmem:[%s870_s21 + $0x30] sm:$0xff] %v273_v37  ;;  %v285_v61 = vmul.f32 %v838_v18, %v215_v21  ;;  %v286_v62 = vmul.f32 %v838_v18, %v216_v22  ;;  %v287_v2 = vmul.f32 %v838_v18, %v217_v23  ;;  %v246_v21 = vld [vmem:[%s813_s25 + $0x188] sm:$0xff]  ;;  %v247_v22 = vld [vmem:[%s813_s25 + $0x190] sm:$0xff] }
  0xae   : > { %338 = vst [vmem:[%s870_s21 + $0x38] sm:$0xff] %v274_v38  ;;  %339 = vst [vmem:[%s870_s21 + $0x40] sm:$0xff] %v275_v43  ;;  %v288_v3 = vmul.f32 %v838_v18, %v218_v24  ;;  %v289_v4 = vmul.f32 %v838_v18, %v219_v25  ;;  %v290_v5 = vmul.f32 %v838_v18, %v220_v26  ;;  %v248_v23 = vld [vmem:[%s813_s25 + $0x198] sm:$0xff]  ;;  %v251_v30 = vld [vmem:[%s813_s25 + $0x1b0] sm:$0xff] }
  0xaf   : > { %340 = vst [vmem:[%s870_s21 + $0x48] sm:$0xff] %v276_v44  ;;  %341 = vst [vmem:[%s870_s21 + $0x50] sm:$0xff] %v277_v45  ;;  %v291_v9 = vmul.f32 %v838_v18, %v221_v31  ;;  %v292_v10 = vmul.f32 %v838_v18, %v222_v32  ;;  %v293_v11 = vmul.f32 %v838_v18, %v223_v33  ;;  %v252_v35 = vld [vmem:[%s813_s25 + $0x1b8] sm:$0xff]  ;;  %v253_v36 = vld [vmem:[%s813_s25 + $0x1c0] sm:$0xff] }
  0xb0   : > { %342 = vst [vmem:[%s870_s21 + $0x58] sm:$0xff] %v278_v46  ;;  %343 = vst [vmem:[%s870_s21 + $0x60] sm:$0xff] %v279_v51  ;;  %v294_v12 = vmul.f32 %v838_v18, %v224_v34  ;;  %v295_v16 = vmul.f32 %v838_v18, %v225_v39  ;;  %v296_v17 = vmul.f32 %v838_v18, %v226_v40  ;;  %v254_v37 = vld [vmem:[%s813_s25 + $0x1c8] sm:$0xff]  ;;  %v256_v43 = vld [vmem:[%s813_s25 + $0x1d8] sm:$0xff] }
  0xb1   : > { %344 = vst [vmem:[%s870_s21 + $0x68] sm:$0xff] %v280_v52  ;;  %345 = vst [vmem:[%s870_s21 + $0x70] sm:$0xff] %v281_v53  ;;  %v297_v19 = vmul.f32 %v838_v18, %v227_v41  ;;  %v298_v20 = vmul.f32 %v838_v18, %v228_v42  ;;  %v299_v24 = vmul.f32 %v838_v18, %v229_v47  ;;  %v255_v42 = vld [vmem:[%s813_s25 + $0x1d0] sm:$0xff]  ;;  %v257_v44 = vld [vmem:[%s813_s25 + $0x1e0] sm:$0xff] }
  0xb2   : > { %346 = vst [vmem:[%s870_s21 + $0x78] sm:$0xff] %v282_v54  ;;  %347 = vst [vmem:[%s870_s21 + $0x80] sm:$0xff] %v283_v59  ;;  %v300_v25 = vmul.f32 %v838_v18, %v230_v48  ;;  %v301_v26 = vmul.f32 %v838_v18, %v231_v49  ;;  %v302_v27 = vmul.f32 %v838_v18, %v232_v50  ;;  %v258_v49 = vld [vmem:[%s813_s25 + $0x1e8] sm:$0xff]  ;;  %v259_v50 = vld [vmem:[%s813_s25 + $0x1f0] sm:$0xff] }
  0xb3   : > { %348 = vst [vmem:[%s870_s21 + $0x88] sm:$0xff] %v284_v60  ;;  %349 = vst [vmem:[%s870_s21 + $0x90] sm:$0xff] %v285_v61  ;;  %v303_v31 = vmul.f32 %v838_v18, %v233_v55  ;;  %v304_v32 = vmul.f32 %v838_v18, %v234_v56  ;;  %v305_v33 = vmul.f32 %v838_v18, %v235_v57  ;;  %v260_v51 = vld [vmem:[%s813_s25 + $0x1f8] sm:$0xff] }
  0xb4   : > { %350 = vst [vmem:[%s870_s21 + $0x98] sm:$0xff] %v286_v62  ;;  %351 = vst [vmem:[%s870_s21 + $0xa0] sm:$0xff] %v287_v2  ;;  %v306_v34 = vmul.f32 %v838_v18, %v236_v58  ;;  %v307_v38 = vmul.f32 %v838_v18, %v237_v63  ;;  %v308_v39 = vmul.f32 %v838_v18, %v238_v0 }
  0xb5   : > { %352 = vst [vmem:[%s870_s21 + $0xa8] sm:$0xff] %v288_v3  ;;  %353 = vst [vmem:[%s870_s21 + $0xb0] sm:$0xff] %v289_v4  ;;  %v309_v40 = vmul.f32 %v838_v18, %v239_v1  ;;  %v310_v41 = vmul.f32 %v838_v18, %v240_v6  ;;  %v311_v45 = vmul.f32 %v838_v18, %v241_v7 }
  0xb6   : > { %354 = vst [vmem:[%s870_s21 + $0xb8] sm:$0xff] %v290_v5  ;;  %355 = vst [vmem:[%s870_s21 + $0xc0] sm:$0xff] %v291_v9  ;;  %v312_v46 = vmul.f32 %v838_v18, %v242_v8  ;;  %v313_v47 = vmul.f32 %v838_v18, %v243_v13  ;;  %v314_v48 = vmul.f32 %v838_v18, %v244_v14 }
  0xb7   : > { %356 = vst [vmem:[%s870_s21 + $0xc8] sm:$0xff] %v292_v10  ;;  %357 = vst [vmem:[%s870_s21 + $0xd0] sm:$0xff] %v293_v11  ;;  %v315_v52 = vmul.f32 %v838_v18, %v245_v15  ;;  %v316_v53 = vmul.f32 %v838_v18, %v246_v21  ;;  %v317_v54 = vmul.f32 %v838_v18, %v247_v22 }
  0xb8   : > { %358 = vst [vmem:[%s870_s21 + $0xd8] sm:$0xff] %v294_v12  ;;  %359 = vst [vmem:[%s870_s21 + $0xe0] sm:$0xff] %v295_v16  ;;  %v318_v55 = vmul.f32 %v838_v18, %v248_v23  ;;  %v319_v56 = vmul.f32 %v838_v18, %v249_v28  ;;  %v320_v57 = vmul.f32 %v838_v18, %v250_v29 }
  0xb9   : > { %360 = vst [vmem:[%s870_s21 + $0xe8] sm:$0xff] %v296_v17  ;;  %361 = vst [vmem:[%s870_s21 + $0xf0] sm:$0xff] %v297_v19  ;;  %v321_v58 = vmul.f32 %v838_v18, %v251_v30  ;;  %v322_v59 = vmul.f32 %v838_v18, %v252_v35  ;;  %v323_v60 = vmul.f32 %v838_v18, %v253_v36 }
  0xba   : > { %362 = vst [vmem:[%s870_s21 + $0xf8] sm:$0xff] %v298_v20  ;;  %363 = vst [vmem:[%s870_s21 + $0x100] sm:$0xff] %v299_v24  ;;  %v324_v61 = vmul.f32 %v838_v18, %v254_v37  ;;  %v325_v62 = vmul.f32 %v838_v18, %v255_v42  ;;  %v326_v63 = vmul.f32 %v838_v18, %v256_v43 }
  0xbb   : > { %364 = vst [vmem:[%s870_s21 + $0x108] sm:$0xff] %v300_v25  ;;  %365 = vst [vmem:[%s870_s21 + $0x110] sm:$0xff] %v301_v26  ;;  %v327_v0 = vmul.f32 %v838_v18, %v257_v44  ;;  %v328_v1 = vmul.f32 %v838_v18, %v258_v49  ;;  %v329_v2 = vmul.f32 %v838_v18, %v259_v50 }
  0xbc   : > { %366 = vst [vmem:[%s870_s21 + $0x118] sm:$0xff] %v302_v27  ;;  %367 = vst [vmem:[%s870_s21 + $0x120] sm:$0xff] %v303_v31  ;;  %v330_v3 = vmul.f32 %v838_v18, %v260_v51 }
  0xbd   : > { %368 = vst [vmem:[%s870_s21 + $0x128] sm:$0xff] %v304_v32  ;;  %369 = vst [vmem:[%s870_s21 + $0x130] sm:$0xff] %v305_v33 }
  0xbe   : > { %370 = vst [vmem:[%s870_s21 + $0x138] sm:$0xff] %v306_v34  ;;  %371 = vst [vmem:[%s870_s21 + $0x140] sm:$0xff] %v307_v38 }
  0xbf   : > { %372 = vst [vmem:[%s870_s21 + $0x148] sm:$0xff] %v308_v39  ;;  %373 = vst [vmem:[%s870_s21 + $0x150] sm:$0xff] %v309_v40 }
  0xc0   : > { %374 = vst [vmem:[%s870_s21 + $0x158] sm:$0xff] %v310_v41  ;;  %375 = vst [vmem:[%s870_s21 + $0x160] sm:$0xff] %v311_v45 }
  0xc1   : > { %376 = vst [vmem:[%s870_s21 + $0x168] sm:$0xff] %v312_v46  ;;  %377 = vst [vmem:[%s870_s21 + $0x170] sm:$0xff] %v313_v47 }
  0xc2   : > { %378 = vst [vmem:[%s870_s21 + $0x178] sm:$0xff] %v314_v48  ;;  %379 = vst [vmem:[%s870_s21 + $0x180] sm:$0xff] %v315_v52 }
  0xc3   : > { %380 = vst [vmem:[%s870_s21 + $0x188] sm:$0xff] %v316_v53  ;;  %381 = vst [vmem:[%s870_s21 + $0x190] sm:$0xff] %v317_v54 }
  0xc4   : > { %382 = vst [vmem:[%s870_s21 + $0x198] sm:$0xff] %v318_v55  ;;  %383 = vst [vmem:[%s870_s21 + $0x1a0] sm:$0xff] %v319_v56 }
  0xc5   : > { %384 = vst [vmem:[%s870_s21 + $0x1a8] sm:$0xff] %v320_v57  ;;  %385 = vst [vmem:[%s870_s21 + $0x1b0] sm:$0xff] %v321_v58 }
  0xc6   : > { %386 = vst [vmem:[%s870_s21 + $0x1b8] sm:$0xff] %v322_v59  ;;  %387 = vst [vmem:[%s870_s21 + $0x1c0] sm:$0xff] %v323_v60 }
  0xc7   : > { %388 = vst [vmem:[%s870_s21 + $0x1c8] sm:$0xff] %v324_v61  ;;  %389 = vst [vmem:[%s870_s21 + $0x1d0] sm:$0xff] %v325_v62 }
  0xc8   : > { %390 = vst [vmem:[%s870_s21 + $0x1d8] sm:$0xff] %v326_v63  ;;  %391 = vst [vmem:[%s870_s21 + $0x1e0] sm:$0xff] %v327_v0 }
  0xc9   : > { %392 = vst [vmem:[%s870_s21 + $0x1e8] sm:$0xff] %v328_v1  ;;  %393 = vst [vmem:[%s870_s21 + $0x1f0] sm:$0xff] %v329_v2 }
  0xca   : > { %394 = vst [vmem:[%s870_s21 + $0x1f8] sm:$0xff] %v330_v3 }
  0xcb   : > { %634 = shalt.err (!%p631_p3)
}
  0xcc   : > { %s635_s15 = scalar_lea.hbm %s1017_s3, 8192  ;;  %s639_s19 = scalar_lea.hbm %s1075_s2, 16384 }
  0xcd   : > { %p636_p5 = scmp.ne.s32.totalorder %s1017_s3, %s635_s15  ;;  %p640_p10 = scmp.lt.s32.totalorder %s1017_s3, %s1075_s2 }
  0xce   : > { %p641_p4 = scmp.lt.s32.totalorder %s639_s19, %s635_s15 }
  0xcf   : > { %p637_p6 = pnand %p636_p5, %p772_p9 }
  0xd0   : > { %p642_p13 = por %p641_p4, %p640_p10 }
  0xd1   : > { %p638_p7 = pneg %p637_p6 }
  0xd3   : > { %p643_p8 = pnand %p642_p13, %p638_p7 }
  0xd5   : > { %646 = shalt.err (!%p643_p8)
}
  0xd6   : > { %531 = dma.vmem_to_hbm [thread:$0]  (%p772_p9), %s1019_s29, 8192, %s1017_s3, %s396_s4  }
  0xd7 PF: > { %s424_s26 = sand.u32 1, %s681_s9   ;;  %p1081_p11 = scmp.ne.s32.totalorder %s1079_s24, 0 }
  0xd8   : > { %p1082_p12 = scmp.ge.s32.totalorder %s701_s14, 2  ;;  %s425_s27 = scalar_lea.sflag [#allocation4], %s424_s26 }
  0xda   : > { %p538_p0 = pnand %p1082_p12, %p1081_p11 }
  0xdc   : > { %p539_p1 = pneg %p538_p0 }
  0xde   : > { %676 = dma.done.wait (%p539_p1), %s425_s27, 8192  }
  0xdf   : > { %678 = vsyncadd (%p539_p1), %s425_s27, 4294959104  ;;  %s18_s14 = sadd.s32 1, %s701_s14   ;;  %s1083_s9 = smov %s685_s10 }
  0xe0   : > { %p15_p2 = scmp.ge.s32.totalorder %s18_s14, 4   ;;  %s1084_s10 = smov %s689_s11 }
  0xe1   : > { %s1085_s11 = smov %s777_s23  ;;  %s1086_s12 = smov %s697_s13 }
  0xe2   : > { %s1087_s13 = smov %s1089_s17  ;;  %17 = sbr.rel (!%p15_p2) target bundleno = 6 (0x6), region = 76 }
  0xe7   :  { %430 = vsyncpa [#allocation3], 1 }
  0xe8   :  { %432 = vsyncpa [#allocation3 + $0x1], 1 }
  0xe9   :  { %433 = vsyncpa [#allocation4], 1 }
  0xea   :  { %435 = vsyncpa [#allocation4 + $0x1], 1 }

</bundles_post_ra>
